<compile_context>
chip_gen: v6e
topology: v6e:2x2x1
jax: 0.10.0
libtpu: 0.0.40
codegen_flags: <defaults>
</compile_context>

<pallas_src>
import jax
import jax.numpy as jnp
from jax.experimental import pallas as pl
from jax.experimental.pallas import tpu as pltpu


def _round_up(x, m):
    return (x + m - 1) // m * m


def actor_kernel(x_ref, w1_ref, b1_ref, w2_ref, b2_ref, w3_ref, b3_ref, out_ref):
    # One batch tile per grid step; weights/biases are VMEM-resident blocks.
    x = x_ref[...]

    h1 = jnp.dot(x, w1_ref[...], preferred_element_type=jnp.float32) + b1_ref[...]
    h1 = jnp.tanh(h1)

    h2 = jnp.dot(h1, w2_ref[...], preferred_element_type=jnp.float32) + b2_ref[...]
    h2 = jnp.tanh(h2)

    # Third matmul produces a lane-dense (TILE_B, out_pad) slab; padded columns
    # carry logit = -1e30 so they contribute exactly 0 to the softmax.
    logits = jnp.dot(h2, w3_ref[...], preferred_element_type=jnp.float32) + b3_ref[...]

    m = jnp.max(logits, axis=1, keepdims=True)
    e = jnp.exp(logits - m)
    s = jnp.sum(e, axis=1, keepdims=True)
    out_ref[...] = (e * pl.reciprocal(s, approx=False)).astype(out_ref.dtype)


def actor_forward(x, params, tile_b=512):
    w1, b1, w2, b2, w3, b3 = params
    batch, in_dim = x.shape
    mid_dim = w1.shape[1]
    out_dim = w3.shape[1]

    # --- lane-dense output: pad out_dim up to a multiple of 128 ---
    out_pad = _round_up(out_dim, 128)
    if out_pad != out_dim:
        w3p = jnp.pad(w3, ((0, 0), (0, out_pad - out_dim)))
        # -1e30 on padded logits -> exp underflows to 0 -> softmax unaffected.
        b3p = jnp.pad(b3, ((0, 0), (0, out_pad - out_dim)), constant_values=-1e30)
    else:
        w3p, b3p = w3, b3

    # --- batch tiling: TILE_B rows per grid step (sublane-aligned) ---
    tb = min(tile_b, _round_up(batch, 8))
    padded_batch = _round_up(batch, tb)
    if padded_batch != batch:
        x = jnp.pad(x, ((0, padded_batch - batch), (0, 0)))
    grid = (padded_batch // tb,)

    # cost hint for the XLA scheduler
    flops = 2 * padded_batch * (in_dim * mid_dim + mid_dim * mid_dim + mid_dim * out_pad)
    transcendentals = padded_batch * (2 * mid_dim + out_pad)  # tanh + exp
    bytes_accessed = 4 * (
        padded_batch * in_dim + padded_batch * out_pad
        + in_dim * mid_dim + mid_dim
        + mid_dim * mid_dim + mid_dim
        + mid_dim * out_pad + out_pad
    )

    out = pl.pallas_call(
        actor_kernel,
        out_shape=jax.ShapeDtypeStruct((padded_batch, out_pad), jnp.float32),
        grid=grid,
        in_specs=[
            pl.BlockSpec((tb, in_dim), lambda i: (i, 0)),        # x: tiled over batch
            pl.BlockSpec((in_dim, mid_dim), lambda i: (0, 0)),   # w1: resident
            pl.BlockSpec((1, mid_dim), lambda i: (0, 0)),        # b1: resident
            pl.BlockSpec((mid_dim, mid_dim), lambda i: (0, 0)),  # w2: resident
            pl.BlockSpec((1, mid_dim), lambda i: (0, 0)),        # b2: resident
            pl.BlockSpec((mid_dim, out_pad), lambda i: (0, 0)),  # w3 (padded): resident
            pl.BlockSpec((1, out_pad), lambda i: (0, 0)),        # b3 (padded): resident
        ],
        out_specs=pl.BlockSpec((tb, out_pad), lambda i: (i, 0)),
        compiler_params=pltpu.CompilerParams(
            dimension_semantics=("parallel",),  # shard batch axis across TCs on v7x
        ),
        cost_estimate=pl.CostEstimate(
            flops=flops,
            transcendentals=transcendentals,
            bytes_accessed=bytes_accessed,
        ),
    )(x, w1, b1, w2, b2, w3p, b3p)

    return out[:batch, :out_dim]


def orthogonal_weight(key, in_dim, out_dim, gain=1.0):
    # Matches nn.init.orthogonal_ on a (out_dim, in_dim) PyTorch Linear weight;
    # returned transposed as (in_dim, out_dim) for y = x @ W.
    w = jax.nn.initializers.orthogonal(scale=gain)(key, (out_dim, in_dim), jnp.float32)
    return jnp.transpose(w)


def make_actor_params(key, input_dim, output_dim, mid_dim=128):
    k1, k2, k3 = jax.random.split(key, 3)
    w1 = orthogonal_weight(k1, input_dim, mid_dim)
    b1 = jnp.zeros((1, mid_dim), jnp.float32)
    w2 = orthogonal_weight(k2, mid_dim, mid_dim)
    b2 = jnp.zeros((1, mid_dim), jnp.float32)
    w3 = orthogonal_weight(k3, mid_dim, output_dim)
    b3 = jnp.zeros((1, output_dim), jnp.float32)
    return (w1, b1, w2, b2, w3, b3)


def actor_forward_ref(x, params):
    # pure-JAX reference for correctness check
    w1, b1, w2, b2, w3, b3 = params
    h = jnp.tanh(x @ w1 + b1)
    h = jnp.tanh(h @ w2 + b2)
    logits = h @ w3 + b3
    return jax.nn.softmax(logits, axis=1)


if __name__ == "__main__":
    key = jax.random.PRNGKey(0)
    kx, kp = jax.random.split(key)

    batch, input_dim, mid_dim, output_dim = 8, 16, 32, 8
    x = jax.random.normal(kx, (batch, input_dim), jnp.float32)
    params = make_actor_params(kp, input_dim, output_dim, mid_dim=mid_dim)

    probs = actor_forward(x, params)
    probs = jax.block_until_ready(probs)

    ref = actor_forward_ref(x, params)
    assert probs.shape == (batch, output_dim)
    assert jnp.allclose(jnp.sum(probs, axis=1), 1.0, atol=1e-5)
    assert jnp.allclose(probs, ref, atol=1e-5, rtol=1e-5)

    print("KERNEL_OK")
</pallas_src>

<mosaic_0001>
module attributes {stable_mosaic.version = 11 : i64} {
  func.func @actor_kernel(%arg0: i32, %arg1: memref<8x16xf32, #tpu.memory_space<vmem>>, %arg2: memref<16x32xf32, #tpu.memory_space<vmem>>, %arg3: memref<1x32xf32, #tpu.memory_space<vmem>>, %arg4: memref<32x32xf32, #tpu.memory_space<vmem>>, %arg5: memref<1x32xf32, #tpu.memory_space<vmem>>, %arg6: memref<32x128xf32, #tpu.memory_space<vmem>>, %arg7: memref<1x128xf32, #tpu.memory_space<vmem>>, %arg8: memref<8x128xf32, #tpu.memory_space<vmem>>) attributes {dimension_semantics = [#tpu.dimension_semantics<parallel>], iteration_bounds = array<i64: 1>, scalar_prefetch = 0 : i64, scratch_operands = 0 : i64, tpu.core_type = #tpu.core_type<tc>, window_params = [{transform_indices = @transform_0, window_bounds = array<i64: 8, 16>}, {pipeline_mode = #tpu.pipeline_mode<synchronous>, transform_indices = @transform_1, window_bounds = array<i64: 16, 32>}, {pipeline_mode = #tpu.pipeline_mode<synchronous>, transform_indices = @transform_2, window_bounds = array<i64: 1, 32>}, {pipeline_mode = #tpu.pipeline_mode<synchronous>, transform_indices = @transform_3, window_bounds = array<i64: 32, 32>}, {pipeline_mode = #tpu.pipeline_mode<synchronous>, transform_indices = @transform_4, window_bounds = array<i64: 1, 32>}, {pipeline_mode = #tpu.pipeline_mode<synchronous>, transform_indices = @transform_5, window_bounds = array<i64: 32, 128>}, {pipeline_mode = #tpu.pipeline_mode<synchronous>, transform_indices = @transform_6, window_bounds = array<i64: 1, 128>}, {transform_indices = @transform_7, window_bounds = array<i64: 8, 128>}]} {
    %c0 = arith.constant 0 : index
    %c0_0 = arith.constant 0 : index
    %0 = vector.load %arg1[%c0, %c0_0] : memref<8x16xf32, #tpu.memory_space<vmem>>, vector<8x16xf32>
    %c0_1 = arith.constant 0 : index
    %c0_2 = arith.constant 0 : index
    %1 = vector.load %arg2[%c0_1, %c0_2] : memref<16x32xf32, #tpu.memory_space<vmem>>, vector<16x32xf32>
    %cst = arith.constant dense<0.000000e+00> : vector<8x32xf32>
    %2 = tpu.matmul %0, %1, %cst {dimension_numbers = #tpu.dot_dimension_numbers<[1], [0], [0], [1], [0, 0, 1, 1], [], []>} : vector<8x16xf32>, vector<16x32xf32>, vector<8x32xf32> -> vector<8x32xf32>
    %c0_3 = arith.constant 0 : index
    %c0_4 = arith.constant 0 : index
    %3 = vector.load %arg3[%c0_3, %c0_4] : memref<1x32xf32, #tpu.memory_space<vmem>>, vector<1x32xf32>
    %4 = vector.broadcast %3 : vector<1x32xf32> to vector<8x32xf32>
    %5 = arith.addf %2, %4 : vector<8x32xf32>
    %6 = math.tanh %5 : vector<8x32xf32>
    %c0_5 = arith.constant 0 : index
    %c0_6 = arith.constant 0 : index
    %7 = vector.load %arg4[%c0_5, %c0_6] : memref<32x32xf32, #tpu.memory_space<vmem>>, vector<32x32xf32>
    %cst_7 = arith.constant dense<0.000000e+00> : vector<8x32xf32>
    %8 = tpu.matmul %6, %7, %cst_7 {dimension_numbers = #tpu.dot_dimension_numbers<[1], [0], [0], [1], [0, 0, 1, 1], [], []>} : vector<8x32xf32>, vector<32x32xf32>, vector<8x32xf32> -> vector<8x32xf32>
    %c0_8 = arith.constant 0 : index
    %c0_9 = arith.constant 0 : index
    %9 = vector.load %arg5[%c0_8, %c0_9] : memref<1x32xf32, #tpu.memory_space<vmem>>, vector<1x32xf32>
    %10 = vector.broadcast %9 : vector<1x32xf32> to vector<8x32xf32>
    %11 = arith.addf %8, %10 : vector<8x32xf32>
    %12 = math.tanh %11 : vector<8x32xf32>
    %c0_10 = arith.constant 0 : index
    %c0_11 = arith.constant 0 : index
    %13 = vector.load %arg6[%c0_10, %c0_11] : memref<32x128xf32, #tpu.memory_space<vmem>>, vector<32x128xf32>
    %cst_12 = arith.constant dense<0.000000e+00> : vector<8x128xf32>
    %14 = tpu.matmul %12, %13, %cst_12 {dimension_numbers = #tpu.dot_dimension_numbers<[1], [0], [0], [1], [0, 0, 1, 1], [], []>} : vector<8x32xf32>, vector<32x128xf32>, vector<8x128xf32> -> vector<8x128xf32>
    %c0_13 = arith.constant 0 : index
    %c0_14 = arith.constant 0 : index
    %15 = vector.load %arg7[%c0_13, %c0_14] : memref<1x128xf32, #tpu.memory_space<vmem>>, vector<1x128xf32>
    %16 = vector.broadcast %15 : vector<1x128xf32> to vector<8x128xf32>
    %17 = arith.addf %14, %16 : vector<8x128xf32>
    %cst_15 = arith.constant dense<0xFF800000> : vector<8xf32>
    %18 = vector.multi_reduction <maximumf>, %17, %cst_15 [1] : vector<8x128xf32> to vector<8xf32>
    %19 = vector.shape_cast %18 : vector<8xf32> to vector<8x1xf32>
    %20 = vector.broadcast %19 : vector<8x1xf32> to vector<8x128xf32>
    %21 = arith.subf %17, %20 : vector<8x128xf32>
    %22 = math.exp %21 : vector<8x128xf32>
    %cst_16 = arith.constant dense<0.000000e+00> : vector<8xf32>
    %23 = vector.multi_reduction <add>, %22, %cst_16 [1] : vector<8x128xf32> to vector<8xf32>
    %24 = vector.shape_cast %23 : vector<8xf32> to vector<8x1xf32>
    %25 = tpu.reciprocal %24 : vector<8x1xf32> -> vector<8x1xf32>
    %26 = vector.broadcast %25 : vector<8x1xf32> to vector<8x128xf32>
    %27 = arith.mulf %22, %26 : vector<8x128xf32>
    %c0_17 = arith.constant 0 : index
    %c0_18 = arith.constant 0 : index
    %28 = vector.load %arg8[%c0_17, %c0_18] : memref<8x128xf32, #tpu.memory_space<vmem>>, vector<8x128xf32>
    tpu.vector_store %arg8[%c0_17, %c0_18], %27 {strides = array<i32>} : memref<8x128xf32, #tpu.memory_space<vmem>>, vector<8x128xf32>,
    return
  }
  func.func @transform_0(%arg0: i32) -> (i32, i32) {
    %c0_i32 = arith.constant 0 : i32
    %c0_i32_0 = arith.constant 0 : i32
    return %arg0, %c0_i32 : i32, i32
  }
  func.func @transform_1(%arg0: i32) -> (i32, i32) {
    %c0_i32 = arith.constant 0 : i32
    %c0_i32_0 = arith.constant 0 : i32
    %c0_i32_1 = arith.constant 0 : i32
    return %c0_i32, %c0_i32_0 : i32, i32
  }
  func.func @transform_2(%arg0: i32) -> (i32, i32) {
    %c0_i32 = arith.constant 0 : i32
    %c0_i32_0 = arith.constant 0 : i32
    %c0_i32_1 = arith.constant 0 : i32
    return %c0_i32, %c0_i32_0 : i32, i32
  }
  func.func @transform_3(%arg0: i32) -> (i32, i32) {
    %c0_i32 = arith.constant 0 : i32
    %c0_i32_0 = arith.constant 0 : i32
    %c0_i32_1 = arith.constant 0 : i32
    return %c0_i32, %c0_i32_0 : i32, i32
  }
  func.func @transform_4(%arg0: i32) -> (i32, i32) {
    %c0_i32 = arith.constant 0 : i32
    %c0_i32_0 = arith.constant 0 : i32
    %c0_i32_1 = arith.constant 0 : i32
    return %c0_i32, %c0_i32_0 : i32, i32
  }
  func.func @transform_5(%arg0: i32) -> (i32, i32) {
    %c0_i32 = arith.constant 0 : i32
    %c0_i32_0 = arith.constant 0 : i32
    %c0_i32_1 = arith.constant 0 : i32
    return %c0_i32, %c0_i32_0 : i32, i32
  }
  func.func @transform_6(%arg0: i32) -> (i32, i32) {
    %c0_i32 = arith.constant 0 : i32
    %c0_i32_0 = arith.constant 0 : i32
    %c0_i32_1 = arith.constant 0 : i32
    return %c0_i32, %c0_i32_0 : i32, i32
  }
  func.func @transform_7(%arg0: i32) -> (i32, i32) {
    %c0_i32 = arith.constant 0 : i32
    %c0_i32_0 = arith.constant 0 : i32
    return %arg0, %c0_i32 : i32, i32
  }
}

</mosaic_0001>

<bundles_post_ra>
// kernel: tpu_custom_call.1
= control target key start
LH: loop header
LB: loop body
LE: loop exit
PB: predicated region body
PF: predicated region fallthrough
CT: control target
= control target key end

     0   :  { %12 = vsyncpa [#allocation3], 0  ;;  %s619_s0 = inlined_call_operand.hbm [shape: f32[8,16], index: 0, kind: input, shape index: {}]   ;;  %s620_s1 = inlined_call_operand.hbm [shape: f32[16,32], index: 1, kind: input, shape index: {}]   ;;  %s621_s2 = inlined_call_operand.vmem [shape: f32[1,32], index: 2, kind: input, shape index: {}]   ;;  %s622_s3 = inlined_call_operand.hbm [shape: f32[32,32], index: 3, kind: input, shape index: {}]   ;;  %s623_s4 = inlined_call_operand.vmem [shape: f32[1,32], index: 4, kind: input, shape index: {}]   ;;  %s624_s5 = inlined_call_operand.hbm [shape: f32[32,128], index: 5, kind: input, shape index: {}]   ;;  %s625_s6 = inlined_call_operand.vmem [shape: f32[1,128], index: 6, kind: input, shape index: {}]   ;;  %s626_s7 = inlined_call_operand.hbm [shape: f32[8,128], index: 7, kind: output, shape index: {}]  }
   0x1   :  { %13 = vsyncpa [#allocation6], 0 }
   0x2   :  { %14 = vsyncpa [#allocation9], 0 }
   0x3   :  { %15 = vsyncpa [#allocation4], 0  ;;  %s535_s24 = smov [#allocation5]  }
   0x4   :  { %s31_s25 = sshll.u32 %s535_s24, 4  ;;  %s32_s25 = int_to_ptr.vmem [resolvable:$true] %s31_s25 }
   0x5   :  { %s435_s26 = scalar_lea.vmem %s32_s25, 256  ;;  %p440_p1 = scmp.lt.s32.totalorder %s32_s25, %s32_s25 }
   0x6   :  { %p436_p0 = scmp.ne.s32.totalorder %s32_s25, %s435_s26  ;;  %p441_p2 = scmp.lt.s32.totalorder %s435_s26, %s435_s26 }
   0x8   :  { %p442_p3 = por %p441_p2, %p440_p1 }
   0xa   :  { %p443_p4 = pnand %p442_p3, %p436_p0 }
   0xc   :  { %446 = shalt.err (!%p443_p4)
}
   0xd   :  { %s536_s27 = smov 128   ;;  %s537_s28 = smov 8  }
   0xe   :  { %37 = dma.hbm_to_vmem [thread:$0]  %s620_s1, 256, %s32_s25, [#allocation6], %s536_s27, %s536_s27, %s537_s28  }
   0xf   :  { %s538_s8 = smov [#allocation2]   ;;  %s539_s10 = smov [#allocation7]  }
  0x10   :  { %s22_s9 = sshll.u32 %s538_s8, 4  ;;  %s45_s11 = sshll.u32 %s539_s10, 4  ;;  %s23_s9 = int_to_ptr.vmem [resolvable:$true] %s22_s9  ;;  %s46_s11 = int_to_ptr.vmem [resolvable:$true] %s45_s11 }
  0x11   :  { %s455_s12 = scalar_lea.vmem %s23_s9, 128  ;;  %p460_p6 = scmp.lt.s32.totalorder %s23_s9, %s23_s9 }
  0x12   :  { %p456_p5 = scmp.ne.s32.totalorder %s23_s9, %s455_s12  ;;  %p461_p7 = scmp.lt.s32.totalorder %s455_s12, %s455_s12 }
  0x14   :  { %p462_p8 = por %p461_p7, %p460_p6 }
  0x16   :  { %p463_p9 = pnand %p462_p8, %p456_p5 }
  0x18   :  { %466 = shalt.err (!%p463_p9)
}
  0x19   :  { %25 = dma.hbm_to_vmem [thread:$0]  %s619_s0, 128, %s23_s9, [#allocation3]  }
  0x1a   :  { %s475_s15 = scalar_lea.vmem %s46_s11, 512  ;;  %p480_p11 = scmp.lt.s32.totalorder %s46_s11, %s46_s11 }
  0x1b   :  { %p476_p10 = scmp.ne.s32.totalorder %s46_s11, %s475_s15  ;;  %p481_p12 = scmp.lt.s32.totalorder %s475_s15, %s475_s15 }
  0x1d   :  { %p482_p13 = por %p481_p12, %p480_p11 }
  0x1f   :  { %p483_p0 = pnand %p482_p13, %p476_p10 }
  0x21   :  { %486 = shalt.err (!%p483_p0)
}
  0x22   :  { %51 = dma.hbm_to_vmem [thread:$0]  %s622_s3, 512, %s46_s11, [#allocation6], %s536_s27, %s536_s27, %s537_s28  }
  0x23   :  { %s540_s17 = smov [#allocation8]  }
  0x24   :  { %s59_s18 = sshll.u32 %s540_s17, 4  ;;  %s60_s18 = int_to_ptr.vmem [resolvable:$true] %s59_s18 }
  0x25   :  { %s495_s19 = scalar_lea.vmem %s60_s18, 512  ;;  %p500_p2 = scmp.lt.s32.totalorder %s60_s18, %s60_s18 }
  0x26   :  { %p496_p1 = scmp.ne.s32.totalorder %s60_s18, %s495_s19  ;;  %p501_p3 = scmp.lt.s32.totalorder %s495_s19, %s495_s19 }
  0x28   :  { %p502_p4 = por %p501_p3, %p500_p2 }
  0x2a   :  { %p503_p5 = pnand %p502_p4, %p496_p1 }
  0x2c   :  { %506 = shalt.err (!%p503_p5)
}
  0x2d   :  { %65 = dma.hbm_to_vmem [thread:$0]  %s624_s5, 512, %s60_s18, [#allocation9], %s536_s27, %s536_s27, %s537_s28  }
  0x2e   :  { %527 = dma.done.wait [#allocation3], 128  }
  0x2f   :  { %528 = vsyncadd [#allocation3], 4294967168 }
  0x30   :  { %529 = dma.done.wait [#allocation6], 768  }
  0x31   :  { %530 = vsyncadd [#allocation6], 4294966528 }
  0x32   :  { %531 = dma.done.wait [#allocation9], 512  }
  0x33   :  { %532 = vsyncadd [#allocation9], 4294966784  ;;  %v541_v0 = vmov 0.0   ;;  %vm542_vm0 = vmmov 0   ;;  %v82_v1 = vld [vmem:[#allocation5 + $0x8] sm:$0xff]  ;;  %v81_v2 = vld [vmem:[#allocation5] sm:$0xff] }
  0x34   :  { %381 = vmatprep.subr.mxu0 %v541_v0  ;;  %385 = vmatprep.mubr.msk.f32.mxu0 %vm542_vm0, %v541_v0  ;;  %v80_v3 = vld [vmem:[#allocation2] sm:$0xff]  ;;  %vm90_vm1 = vcmask 130048   ;;  %v168_v4 = vld [vmem:[#allocation7 + $0x18] sm:$0xff]  ;;  %v167_v5 = vld [vmem:[#allocation7 + $0x10] sm:$0xff]  ;;  %vm176_vm2 = vcmask 261120  }
  0x35   :  { %388 = vmatprep.subr.mxu1 %v541_v0  ;;  %396 = vmatprep.mubr.msk.f32.mxu1 %vm542_vm0, %v541_v0  ;;  %v166_v6 = vld [vmem:[#allocation7 + $0x8] sm:$0xff]  ;;  %v165_v7 = vld [vmem:[#allocation7] sm:$0xff]  ;;  %v254_v13 = vld [vmem:[#allocation8 + $0x18] sm:$0xff] }
  0x36   :  { %382 = vmatpush3.msra.mxu0 %v82_v1  ;;  %389 = vmatpush3.msra.mxu1 %v168_v4  ;;  %v362_v8 = vld [vmem:[%s621_s2] ss:$0 sm:$0xff]  ;;  %v253_v14 = vld [vmem:[#allocation8 + $0x10] sm:$0xff]  ;;  %v251_v16 = vld [vmem:[#allocation8] sm:$0xff] }
  0x37   :  { %383 = vmatprep.subr.mxu0 %v541_v0  ;;  %390 = vmatprep.subr.mxu1 %v541_v0  ;;  %v252_v15 = vld [vmem:[#allocation8 + $0x8] sm:$0xff] }
  0x38   :  { %384 = vmatpush3.msra.mxu0 %v81_v2  ;;  %391 = vmatpush3.msra.mxu1 %v167_v5  ;;  %v364_v17 = vld [vmem:[%s623_s4] ss:$0 sm:$0xff]  ;;  %s543_s4 = smov [#allocation10]  }
  0x39   :  { %386 = vmatmul.mubr.msk.f32.vlgmr.msra.gmra.mxu0 %vm90_vm1, %v80_v3  ;;  %399 = vmatprep.subr.mxu0 %v541_v0  ;;  %v366_v22 = vld [vmem:[%s625_s6] ss:$0 sm:$0xff]  ;;  %s351_s24 = sshll.u32 %s543_s4, 4  ;;  %s352_s24 = int_to_ptr.vmem [resolvable:$true] %s351_s24 }
  0x3a   :  { %407 = vmatprep.mubr.msk.f32.mxu0 %vm542_vm0, %v541_v0  ;;  %392 = vmatprep.subr.mxu1 %v541_v0  ;;  %s507_s25 = scalar_lea.vmem %s352_s24, 128  ;;  %p512_p7 = scmp.lt.s32.totalorder %s352_s24, %s352_s24 }
  0x3b   :  { %393 = vmatpush3.msra.mxu1 %v166_v6  ;;  %400 = vmatpush3.msra.mxu0 %v254_v13  ;;  %p508_p6 = scmp.ne.s32.totalorder %s352_s24, %s507_s25  ;;  %p513_p8 = scmp.lt.s32.totalorder %s507_s25, %s507_s25 }
  0x3c   :  { %394 = vmatprep.subr.mxu1 %v541_v0  ;;  %401 = vmatprep.subr.mxu0 %v541_v0 }
  0x3d   :  { %395 = vmatpush3.msra.mxu1 %v165_v7  ;;  %402 = vmatpush3.msra.mxu0 %v253_v14  ;;  %p514_p9 = por %p513_p8, %p512_p7 }
  0x3e   :  { %403 = vmatprep.subr.mxu0 %v541_v0 }
  0x3f   :  { %404 = vmatpush3.msra.mxu0 %v252_v15  ;;  %p515_p10 = pnand %p514_p9, %p508_p6 }
  0x40   :  { %405 = vmatprep.subr.mxu0 %v541_v0 }
  0x41   :  { %406 = vmatpush3.msra.mxu0 %v251_v16 }
  0xf9   :  { %v160_v9 = vpop.f32.mrf.mxu0 }
  0xfa   :  { %v161_v10 = vadd.f32 %v362_v8, %v160_v9 }
  0xfb   :  { %v387_v11 = vpop.f32.mrf.mxu0 }
  0xfc   :  { %419 = vtanh.f32 %v161_v10 }
 0x109   :  { %v420_v12 = vpop.eup %419 }
 0x10a   :  { %397 = vmatmul.mubr.msk.f32.vlgmr.msra.gmra.mxu1 %vm176_vm2, %v420_v12 }
 0x1ca   :  { %v246_v18 = vpop.f32.mrf.mxu1 }
 0x1cb   :  { %v247_v19 = vadd.f32 %v364_v17, %v246_v18 }
 0x1cc   :  { %v398_v20 = vpop.f32.mrf.mxu1 }
 0x1cd   :  { %421 = vtanh.f32 %v247_v19 }
 0x1da   :  { %v422_v21 = vpop.eup %421 }
 0x1db   :  { %408 = vmatmul.mubr.msk.f32.vlgmr.msra.gmra.mxu0 %vm176_vm2, %v422_v21 }
 0x29b   :  { %v331_v23 = vpop.f32.mrf.mxu0 }
 0x29c   :  { %v332_v24 = vadd.f32 %v366_v22, %v331_v23 }
 0x29d   :  { %v409_v25 = vpop.f32.mrf.mxu0 }
 0x29e   :  { %335 = vmax.xlane.f32.xlu0 %v332_v24 }
 0x327   :  { %v336_v26 = vpop.xlane.xlu0 %335 }
 0x328   :  { %v337_v27 = vsub.f32 %v332_v24, %v336_v26 }
 0x32a   :  { %v338_v28 = vmul.f32 1.442695, %v337_v27 }
 0x32c   :  { %423 = vpow2.f32 %v338_v28 }
 0x339   :  { %v424_v29 = vpop.eup %423 }
 0x33a   :  { %340 = vadd.xlane.f32.xlu0 %v424_v29 }
 0x3c3   :  { %v341_v30 = vpop.xlane.xlu0 %340 }
 0x3c4   :  { %425 = vrcp.f32 %v341_v30 }
 0x3d1   :  { %v426_v31 = vpop.eup %425 }
 0x3d2   :  { %v343_v32 = vmul.f32 %v426_v31, %v424_v29 }
 0x3d4   :  { %344 = vst [vmem:[#allocation10] sm:$0xff] %v343_v32 }
 0x3d5   :  { %518 = shalt.err (!%p515_p10)
}
 0x3d6   :  { %354 = dma.vmem_to_hbm [thread:$0]  %s352_s24, 128, %s626_s7, [#allocation4]  }
 0x3d7   :  { %533 = dma.done.wait [#allocation4], 128  }
 0x3d8   :  { %534 = vsyncadd [#allocation4], 4294967168 }
 0x3d9   :  { %358 = vsyncpa [#allocation3], 1 }
 0x3da   :  { %359 = vsyncpa [#allocation6], 1 }
 0x3db   :  { %360 = vsyncpa [#allocation9], 1 }
 0x3dc   :  { %361 = vsyncpa [#allocation4], 1 }

</bundles_post_ra>
